<compile_context>
chip_gen: v7x
topology: tpu7x:2x2x1
jax: 0.10.0
libtpu: 0.0.40
codegen_flags: <defaults>
</compile_context>

<pallas_src>
import functools
import math
import random

import numpy as np

import jax
import jax.numpy as jnp
from jax.experimental import pallas as pl
from jax.experimental.pallas import tpu as pltpu


# --------------------------------------------------------------------------- #
# Kernel
# --------------------------------------------------------------------------- #
def _phase_vocoder_kernel(r0_ref, i0_ref, r1_ref, i1_ref, alpha_ref,
                          out_r_ref, out_i_ref, *, n_steps):
    r0 = r0_ref[...]
    i0 = i0_ref[...]
    r1 = r1_ref[...]
    i1 = i1_ref[...]

    # --- unit phasors via rsqrt (EUP slot) instead of sqrt + divide (VALU) ---
    e0 = r0 * r0 + i0 * i0
    e1 = r1 * r1 + i1 * i1
    nz0 = e0 > 0.0
    nz1 = e1 > 0.0
    inv0 = jax.lax.rsqrt(jnp.where(nz0, e0, 1.0))
    inv1 = jax.lax.rsqrt(jnp.where(nz1, e1, 1.0))
    u0r = jnp.where(nz0, r0 * inv0, 1.0)   # angle(0+0j) == 0 -> phasor (1, 0)
    u0i = jnp.where(nz0, i0 * inv0, 0.0)
    u1r = jnp.where(nz1, r1 * inv1, 1.0)
    u1i = jnp.where(nz1, i1 * inv1, 0.0)
    n0 = e0 * inv0                         # |spec0|  (exactly 0 where e0 == 0)
    n1 = e1 * inv1                         # |spec1|

    # Per-step rotation w[t] = u1[t]*conj(u0[t]) == exp(i*(angle_1 - angle_0)).
    # (phase_advance and the 2*pi wrap of the torch code cancel exactly here.)
    wr = u1r * u0r + u1i * u0i
    wi = u1i * u0r - u1r * u0i

    # (1, t_pad) lane iota / masks only -- jnp.where broadcasts over rows, so no
    # full-tile int32 temporaries are materialized.
    t_pad = r0.shape[1]
    lane = jax.lax.broadcasted_iota(jnp.int32, (1, t_pad), 1)

    # Scan input: v[0] = phasor(spec[..., 0]); v[t] = w[t-1] for t >= 1.
    acc_r = jnp.where(lane == 0, u0r[:, 0:1], pltpu.roll(wr, 1, axis=1))
    acc_i = jnp.where(lane == 0, u0i[:, 0:1], pltpu.roll(wi, 1, axis=1))

    # Log-step (Hillis-Steele) inclusive prefix product over the lane axis:
    #   acc <- acc * shift_right(acc, s); lanes < s use the identity (1, 0).
    # Rolls go to the XLU; the complex multiplies are full-vreg VPU work.
    # TODO(synk): a two-level scan (7 masked intra-128-lane steps + a tiny
    # group-carry scan) would trim the shift>=128 full-width steps (~20-40%
    # VALU for t_out >= 512); kept single-level for robustness.
    shift = 1
    for _ in range(n_steps):
        rolled_r = pltpu.roll(acc_r, shift, axis=1)
        rolled_i = pltpu.roll(acc_i, shift, axis=1)
        keep = lane >= shift
        sr = jnp.where(keep, rolled_r, 1.0)
        si = jnp.where(keep, rolled_i, 0.0)
        new_r = acc_r * sr - acc_i * si
        new_i = acc_r * si + acc_i * sr
        acc_r, acc_i = new_r, new_i
        shift *= 2

    # Single renormalization bounds magnitude drift of the phasor product.
    inv_acc = jax.lax.rsqrt(jnp.maximum(acc_r * acc_r + acc_i * acc_i, 1e-30))
    acc_r = acc_r * inv_acc
    acc_i = acc_i * inv_acc

    # Linear magnitude interpolation (one fewer VALU op than a*n1+(1-a)*n0);
    # one lane-dense full-tile store per output plane.
    alpha = alpha_ref[...]
    mag = n0 + alpha * (n1 - n0)
    out_r_ref[...] = acc_r * mag
    out_i_ref[...] = acc_i * mag


# --------------------------------------------------------------------------- #
# Tiling plan (cached per (rows, t_pad); generation-aware)
# --------------------------------------------------------------------------- #
@functools.lru_cache(maxsize=None)
def _plan_blocks(n_rows: int, t_pad: int):
    """Return (block_rows, num_blocks, vmem_limit_bytes)."""
    try:
        vmem_cap = int(pltpu.get_tpu_info().vmem_capacity_bytes)
    except Exception:                       # no TPU / interpret mode
        vmem_cap = 64 * 1024 * 1024
    # <= 50% of physical VMEM: 32 MiB scoped on v7x (64 MiB/TC), 64 MiB on
    # v5e/v6e (128 MiB) -> headroom for pipeline buffers, spills, scratch.
    vmem_limit = int(min(vmem_cap // 2, 64 * 1024 * 1024))
    budget = int(vmem_limit * 0.7)
    # ~24 live (block_rows, t_pad) f32 tiles: (4 in + 2 out) x 2 pipeline
    # buffers + scan temporaries.  TODO(synk): verify the constant against the
    # Mosaic VMEM report after any kernel restructure.
    per_row_bytes = t_pad * 4 * 24
    max_block = max(8, min(1024, (budget // per_row_bytes) // 8 * 8))

    n_rows8 = ((n_rows + 7) // 8) * 8
    chunks = n_rows8 // 8                   # number of 8-row sublane chunks
    divisors = [d for d in range(1, chunks + 1) if chunks % d == 0]

    def fits(nb):
        return (chunks // nb) * 8 <= max_block

    # Prefer an even number of blocks (>= 2) so v7x's two TensorCores split the
    # grid evenly, and a divisor of the chunk count so no padded rows of
    # compute/HBM are added; smallest such count -> fewer, larger blocks.
    num_blocks = None
    for d in divisors:
        if d >= 2 and d % 2 == 0 and fits(d):
            num_blocks = d
            break
    if num_blocks is None:
        for d in divisors:
            if d >= 2 and fits(d):
                num_blocks = d
                break
    if num_blocks is None:
        num_blocks = 1 if (chunks == 1 or fits(1)) else chunks
    block_rows = (chunks // num_blocks) * 8
    return block_rows, num_blocks, vmem_limit


# --------------------------------------------------------------------------- #
# Padded, jitted pipeline (one compile per 128-lane t_out bucket)
# --------------------------------------------------------------------------- #
@functools.partial(
    jax.jit,
    static_argnames=("block_rows", "num_blocks", "n_steps", "vmem_limit"))
def _time_stretch_padded(spec, t0, alpha, *, block_rows, num_blocks, n_steps,
                         vmem_limit):
    B, F, T = spec.shape
    N = B * F
    n_pad = block_rows * num_blocks
    t_pad = t0.shape[0]

    # Split real/imag once and pad ONCE on the small pre-gather planes: rows to
    # the block multiple, time by the two zero columns torch appends.  The
    # column gather below also serves the padded (lane >= t_out) columns since
    # their t0 entries point at a zero column -> no second pad needed.
    re = jnp.real(spec).reshape(N, T).astype(jnp.float32)
    im = jnp.imag(spec).reshape(N, T).astype(jnp.float32)
    re = jnp.pad(re, ((0, n_pad - N), (0, 2)))
    im = jnp.pad(im, ((0, n_pad - N), (0, 2)))

    # TODO(synk): the frame gather could move inside the kernel (pass the
    # padded planes once + t0 via PrefetchScalarGridSpec, gather in VMEM) to
    # roughly halve input HBM traffic; kept as an XLA gather fused in this jit.
    t0 = t0.astype(jnp.int32)
    r0 = jnp.take(re, t0, axis=1)
    i0 = jnp.take(im, t0, axis=1)
    r1 = jnp.take(re, t0 + 1, axis=1)
    i1 = jnp.take(im, t0 + 1, axis=1)
    alpha2 = alpha.reshape(1, t_pad).astype(jnp.float32)

    row_spec = pl.BlockSpec((block_rows, t_pad), lambda i: (i, 0))
    alpha_spec = pl.BlockSpec((1, t_pad), lambda i: (0, 0))
    # TODO(synk): if xprof shows exposed input DMA on v5e (short t_out), bump
    #             the row inputs to pipeline_mode=pl.Buffered(3) and shrink
    #             block_rows to stay inside the VMEM budget.
    # TODO(synk): for very long spectrograms add a second "arbitrary" time grid
    #             axis with a VMEM scratch carrying the boundary phasor so the
    #             lane width stays bounded independent of T.

    out_r, out_i = pl.pallas_call(
        functools.partial(_phase_vocoder_kernel, n_steps=n_steps),
        out_shape=(
            jax.ShapeDtypeStruct((n_pad, t_pad), jnp.float32),
            jax.ShapeDtypeStruct((n_pad, t_pad), jnp.float32),
        ),
        grid=(num_blocks,),
        in_specs=[row_spec, row_spec, row_spec, row_spec, alpha_spec],
        out_specs=(row_spec, row_spec),
        compiler_params=pltpu.CompilerParams(
            dimension_semantics=("parallel",),
            vmem_limit_bytes=vmem_limit,
        ),
    )(r0, i0, r1, i1, alpha2)
    return out_r, out_i


def time_stretch(spec: jax.Array, rate: float) -> jax.Array:
    """Pallas TPU phase vocoder.  spec: (B, F, T) complex -> (B, F, ceil(T/rate))."""
    B, F, T = spec.shape
    N = B * F

    # Host-side (cheap numpy) resampling grid for this rate.
    time_steps = np.arange(0.0, T, float(rate))
    t_out = int(time_steps.shape[0])

    # Bucket the stretched width to a multiple of 128 lanes so the trace (and
    # the compile) depends only on the bucket, never on the random rate: at
    # most ~ceil((T/0.7)/128) cached compiles per input shape.  Lanes >= t_out
    # gather the zero column -> identity phasor & zero magnitude, sliced off.
    t_pad = max(128, ((t_out + 127) // 128) * 128)
    n_steps = max(0, t_pad - 1).bit_length()        # ceil(log2(t_pad))

    t0 = np.full((t_pad,), T, dtype=np.int32)       # padded lanes -> zero col
    t0[:t_out] = time_steps.astype(np.int32)
    alpha = np.zeros((t_pad,), dtype=np.float32)
    alpha[:t_out] = (time_steps % 1.0).astype(np.float32)

    block_rows, num_blocks, vmem_limit = _plan_blocks(N, t_pad)

    out_r, out_i = _time_stretch_padded(
        spec, jnp.asarray(t0), jnp.asarray(alpha),
        block_rows=block_rows, num_blocks=num_blocks, n_steps=n_steps,
        vmem_limit=vmem_limit)

    out = jax.lax.complex(out_r[:N, :t_out], out_i[:N, :t_out])
    return out.reshape(B, F, t_out)


class TimeStretch:
    """Mirrors the torch module: draws a random rate per forward, phase-vocodes."""

    def __init__(self, fixed_rate=1.0):
        self.fixed_rate = float(fixed_rate)

    def __call__(self, data: jax.Array) -> jax.Array:
        # self._aug.fixed_rate = random.uniform(0.7, 1.5) in the torch module.
        # TODO(synk): host-side Python RNG (random.uniform) stays outside the kernel.
        self.fixed_rate = random.uniform(0.7, 1.5)
        x = data[:, None, :, :]                  # unsqueeze(1) — no-op channel dim
        y = time_stretch(x[:, 0], self.fixed_rate)
        return y                                 # squeeze(1)


# --------------------------------------------------------------------------- #
# float64 numpy reference (torchaudio.functional.phase_vocoder transcription)
# --------------------------------------------------------------------------- #
def _reference_phase_vocoder(spec, rate, hop_length):
    spec = np.asarray(spec).astype(np.complex128)
    B, F, T = spec.shape
    phase_advance = np.linspace(0.0, math.pi * hop_length, F)[None, :, None]
    time_steps = np.arange(0.0, T, rate)
    alphas = (time_steps % 1.0)[None, None, :]
    t0 = time_steps.astype(np.int64)

    phase_0 = np.angle(spec[..., :1])
    spec_p = np.pad(spec, ((0, 0), (0, 0), (0, 2)))
    s0 = spec_p[:, :, t0]
    s1 = spec_p[:, :, t0 + 1]
    angle_0 = np.angle(s0)
    angle_1 = np.angle(s1)
    norm_0 = np.abs(s0)
    norm_1 = np.abs(s1)

    phase = angle_1 - angle_0 - phase_advance
    phase = phase - 2.0 * math.pi * np.round(phase / (2.0 * math.pi))
    phase = phase + phase_advance
    phase = np.concatenate([phase_0, phase[..., :-1]], axis=-1)
    phase_acc = np.cumsum(phase, axis=-1)

    mag = alphas * norm_1 + (1.0 - alphas) * norm_0
    return mag * np.exp(1j * phase_acc)


if __name__ == "__main__":
    random.seed(0)

    B, F, T = 2, 16, 16
    key = jax.random.PRNGKey(0)
    kr, ki = jax.random.split(key)
    real = jax.random.normal(kr, (B, F, T), dtype=jnp.float32)
    imag = jax.random.normal(ki, (B, F, T), dtype=jnp.float32)
    data = jax.lax.complex(real, imag)           # complex spectrogram batch (B, F, T)

    # torchaudio default hop_length = n_fft // 2 with n_fft = 2*(F-1); it
    # cancels algebraically, the reference uses it only to mirror torch.
    hop_length = (2 * (F - 1)) // 2

    aug = TimeStretch(fixed_rate=1.0)
    out = jax.block_until_ready(aug(data))
    ref = _reference_phase_vocoder(data, aug.fixed_rate, hop_length)
    np.testing.assert_allclose(np.asarray(out).astype(np.complex128), ref,
                               rtol=1e-3, atol=1e-3)

    # Second draw (different rate, same 128-lane bucket) reuses the compile.
    out_b = jax.block_until_ready(aug(data))
    ref_b = _reference_phase_vocoder(data, aug.fixed_rate, hop_length)
    np.testing.assert_allclose(np.asarray(out_b).astype(np.complex128), ref_b,
                               rtol=1e-3, atol=1e-3)

    # Longer time axis (rate != 1, t_out > 128) exercises the cross-vreg scan.
    T2 = 300
    kr2, ki2 = jax.random.split(jax.random.PRNGKey(1))
    data2 = jax.lax.complex(
        jax.random.normal(kr2, (B, F, T2), dtype=jnp.float32),
        jax.random.normal(ki2, (B, F, T2), dtype=jnp.float32))
    rate2 = 0.83
    out2 = jax.block_until_ready(time_stretch(data2, rate2))
    ref2 = _reference_phase_vocoder(data2, rate2, hop_length)
    np.testing.assert_allclose(np.asarray(out2).astype(np.complex128), ref2,
                               rtol=1e-3, atol=1e-3)

    print("KERNEL_OK")
</pallas_src>

<mosaic_0001>
module attributes {stable_mosaic.version = 11 : i64} {
  func.func @_phase_vocoder_kernel(%arg0: i32, %arg1: memref<16x128xf32, #tpu.memory_space<vmem>>, %arg2: memref<16x128xf32, #tpu.memory_space<vmem>>, %arg3: memref<16x128xf32, #tpu.memory_space<vmem>>, %arg4: memref<16x128xf32, #tpu.memory_space<vmem>>, %arg5: memref<1x128xf32, #tpu.memory_space<vmem>>, %arg6: memref<16x128xf32, #tpu.memory_space<vmem>>, %arg7: memref<16x128xf32, #tpu.memory_space<vmem>>) attributes {dimension_semantics = [#tpu.dimension_semantics<parallel>], iteration_bounds = array<i64: 2>, scalar_prefetch = 0 : i64, scratch_operands = 0 : i64, tpu.core_type = #tpu.core_type<tc>, window_params = [{transform_indices = @transform_0, window_bounds = array<i64: 16, 128>}, {transform_indices = @transform_1, window_bounds = array<i64: 16, 128>}, {transform_indices = @transform_2, window_bounds = array<i64: 16, 128>}, {transform_indices = @transform_3, window_bounds = array<i64: 16, 128>}, {pipeline_mode = #tpu.pipeline_mode<synchronous>, transform_indices = @transform_4, window_bounds = array<i64: 1, 128>}, {transform_indices = @transform_5, window_bounds = array<i64: 16, 128>}, {transform_indices = @transform_6, window_bounds = array<i64: 16, 128>}]} {
    %c0 = arith.constant 0 : index
    %c0_0 = arith.constant 0 : index
    %0 = vector.load %arg1[%c0, %c0_0] : memref<16x128xf32, #tpu.memory_space<vmem>>, vector<16x128xf32>
    %c0_1 = arith.constant 0 : index
    %c0_2 = arith.constant 0 : index
    %1 = vector.load %arg2[%c0_1, %c0_2] : memref<16x128xf32, #tpu.memory_space<vmem>>, vector<16x128xf32>
    %c0_3 = arith.constant 0 : index
    %c0_4 = arith.constant 0 : index
    %2 = vector.load %arg3[%c0_3, %c0_4] : memref<16x128xf32, #tpu.memory_space<vmem>>, vector<16x128xf32>
    %c0_5 = arith.constant 0 : index
    %c0_6 = arith.constant 0 : index
    %3 = vector.load %arg4[%c0_5, %c0_6] : memref<16x128xf32, #tpu.memory_space<vmem>>, vector<16x128xf32>
    %4 = arith.mulf %0, %0 : vector<16x128xf32>
    %5 = arith.mulf %1, %1 : vector<16x128xf32>
    %6 = arith.addf %4, %5 : vector<16x128xf32>
    %7 = arith.mulf %2, %2 : vector<16x128xf32>
    %8 = arith.mulf %3, %3 : vector<16x128xf32>
    %9 = arith.addf %7, %8 : vector<16x128xf32>
    %cst = arith.constant 0.000000e+00 : f32
    %10 = vector.broadcast %cst : f32 to vector<16x128xf32>
    %11 = arith.cmpf ogt, %6, %10 : vector<16x128xf32>
    %cst_7 = arith.constant 0.000000e+00 : f32
    %12 = vector.broadcast %cst_7 : f32 to vector<16x128xf32>
    %13 = arith.cmpf ogt, %9, %12 : vector<16x128xf32>
    %cst_8 = arith.constant 1.000000e+00 : f32
    %14 = vector.broadcast %cst_8 : f32 to vector<16x128xf32>
    %15 = arith.select %11, %6, %14 : vector<16x128xi1>, vector<16x128xf32>
    %16 = math.rsqrt %15 : vector<16x128xf32>
    %cst_9 = arith.constant 1.000000e+00 : f32
    %17 = vector.broadcast %cst_9 : f32 to vector<16x128xf32>
    %18 = arith.select %13, %9, %17 : vector<16x128xi1>, vector<16x128xf32>
    %19 = math.rsqrt %18 : vector<16x128xf32>
    %20 = arith.mulf %0, %16 : vector<16x128xf32>
    %cst_10 = arith.constant 1.000000e+00 : f32
    %21 = vector.broadcast %cst_10 : f32 to vector<16x128xf32>
    %22 = arith.select %11, %20, %21 : vector<16x128xi1>, vector<16x128xf32>
    %23 = arith.mulf %1, %16 : vector<16x128xf32>
    %cst_11 = arith.constant 0.000000e+00 : f32
    %24 = vector.broadcast %cst_11 : f32 to vector<16x128xf32>
    %25 = arith.select %11, %23, %24 : vector<16x128xi1>, vector<16x128xf32>
    %26 = arith.mulf %2, %19 : vector<16x128xf32>
    %cst_12 = arith.constant 1.000000e+00 : f32
    %27 = vector.broadcast %cst_12 : f32 to vector<16x128xf32>
    %28 = arith.select %13, %26, %27 : vector<16x128xi1>, vector<16x128xf32>
    %29 = arith.mulf %3, %19 : vector<16x128xf32>
    %cst_13 = arith.constant 0.000000e+00 : f32
    %30 = vector.broadcast %cst_13 : f32 to vector<16x128xf32>
    %31 = arith.select %13, %29, %30 : vector<16x128xi1>, vector<16x128xf32>
    %32 = arith.mulf %6, %16 : vector<16x128xf32>
    %33 = arith.mulf %9, %19 : vector<16x128xf32>
    %34 = arith.mulf %28, %22 : vector<16x128xf32>
    %35 = arith.mulf %31, %25 : vector<16x128xf32>
    %36 = arith.addf %34, %35 : vector<16x128xf32>
    %37 = arith.mulf %31, %22 : vector<16x128xf32>
    %38 = arith.mulf %28, %25 : vector<16x128xf32>
    %39 = arith.subf %37, %38 : vector<16x128xf32>
    %40 = tpu.iota {dimensions = array<i32: 1>} : vector<1x128xi32>
    %c0_i32 = arith.constant 0 : i32
    %41 = vector.broadcast %c0_i32 : i32 to vector<1x128xi32>
    %42 = arith.cmpi eq, %40, %41 : vector<1x128xi32>
    %43 = vector.extract_strided_slice %22 {offsets = [0, 0], sizes = [16, 1], strides = [1, 1]} : vector<16x128xf32> to vector<16x1xf32>
    %c1_i32 = arith.constant 1 : i32
    %44 = tpu.dynamic_rotate %36 by %c1_i32 dim 1 : vector<16x128xf32>, i32 -> vector<16x128xf32>
    %45 = vector.shape_cast %42 : vector<1x128xi1> to vector<1x128xi1>
    %46 = vector.broadcast %45 : vector<1x128xi1> to vector<16x128xi1>
    %47 = vector.shape_cast %43 : vector<16x1xf32> to vector<16x1xf32>
    %48 = vector.broadcast %47 : vector<16x1xf32> to vector<16x128xf32>
    %49 = arith.select %46, %48, %44 : vector<16x128xi1>, vector<16x128xf32>
    %c0_i32_14 = arith.constant 0 : i32
    %50 = vector.broadcast %c0_i32_14 : i32 to vector<1x128xi32>
    %51 = arith.cmpi eq, %40, %50 : vector<1x128xi32>
    %52 = vector.extract_strided_slice %25 {offsets = [0, 0], sizes = [16, 1], strides = [1, 1]} : vector<16x128xf32> to vector<16x1xf32>
    %c1_i32_15 = arith.constant 1 : i32
    %53 = tpu.dynamic_rotate %39 by %c1_i32_15 dim 1 : vector<16x128xf32>, i32 -> vector<16x128xf32>
    %54 = vector.shape_cast %51 : vector<1x128xi1> to vector<1x128xi1>
    %55 = vector.broadcast %54 : vector<1x128xi1> to vector<16x128xi1>
    %56 = vector.shape_cast %52 : vector<16x1xf32> to vector<16x1xf32>
    %57 = vector.broadcast %56 : vector<16x1xf32> to vector<16x128xf32>
    %58 = arith.select %55, %57, %53 : vector<16x128xi1>, vector<16x128xf32>
    %c1_i32_16 = arith.constant 1 : i32
    %59 = tpu.dynamic_rotate %49 by %c1_i32_16 dim 1 : vector<16x128xf32>, i32 -> vector<16x128xf32>
    %c1_i32_17 = arith.constant 1 : i32
    %60 = tpu.dynamic_rotate %58 by %c1_i32_17 dim 1 : vector<16x128xf32>, i32 -> vector<16x128xf32>
    %c1_i32_18 = arith.constant 1 : i32
    %61 = vector.broadcast %c1_i32_18 : i32 to vector<1x128xi32>
    %62 = arith.cmpi sge, %40, %61 : vector<1x128xi32>
    %cst_19 = arith.constant 1.000000e+00 : f32
    %63 = vector.shape_cast %62 : vector<1x128xi1> to vector<1x128xi1>
    %64 = vector.broadcast %63 : vector<1x128xi1> to vector<16x128xi1>
    %65 = vector.broadcast %cst_19 : f32 to vector<16x128xf32>
    %66 = arith.select %64, %59, %65 : vector<16x128xi1>, vector<16x128xf32>
    %cst_20 = arith.constant 0.000000e+00 : f32
    %67 = vector.shape_cast %62 : vector<1x128xi1> to vector<1x128xi1>
    %68 = vector.broadcast %67 : vector<1x128xi1> to vector<16x128xi1>
    %69 = vector.broadcast %cst_20 : f32 to vector<16x128xf32>
    %70 = arith.select %68, %60, %69 : vector<16x128xi1>, vector<16x128xf32>
    %71 = arith.mulf %49, %66 : vector<16x128xf32>
    %72 = arith.mulf %58, %70 : vector<16x128xf32>
    %73 = arith.subf %71, %72 : vector<16x128xf32>
    %74 = arith.mulf %49, %70 : vector<16x128xf32>
    %75 = arith.mulf %58, %66 : vector<16x128xf32>
    %76 = arith.addf %74, %75 : vector<16x128xf32>
    %c2_i32 = arith.constant 2 : i32
    %77 = tpu.dynamic_rotate %73 by %c2_i32 dim 1 : vector<16x128xf32>, i32 -> vector<16x128xf32>
    %c2_i32_21 = arith.constant 2 : i32
    %78 = tpu.dynamic_rotate %76 by %c2_i32_21 dim 1 : vector<16x128xf32>, i32 -> vector<16x128xf32>
    %c2_i32_22 = arith.constant 2 : i32
    %79 = vector.broadcast %c2_i32_22 : i32 to vector<1x128xi32>
    %80 = arith.cmpi sge, %40, %79 : vector<1x128xi32>
    %cst_23 = arith.constant 1.000000e+00 : f32
    %81 = vector.shape_cast %80 : vector<1x128xi1> to vector<1x128xi1>
    %82 = vector.broadcast %81 : vector<1x128xi1> to vector<16x128xi1>
    %83 = vector.broadcast %cst_23 : f32 to vector<16x128xf32>
    %84 = arith.select %82, %77, %83 : vector<16x128xi1>, vector<16x128xf32>
    %cst_24 = arith.constant 0.000000e+00 : f32
    %85 = vector.shape_cast %80 : vector<1x128xi1> to vector<1x128xi1>
    %86 = vector.broadcast %85 : vector<1x128xi1> to vector<16x128xi1>
    %87 = vector.broadcast %cst_24 : f32 to vector<16x128xf32>
    %88 = arith.select %86, %78, %87 : vector<16x128xi1>, vector<16x128xf32>
    %89 = arith.mulf %73, %84 : vector<16x128xf32>
    %90 = arith.mulf %76, %88 : vector<16x128xf32>
    %91 = arith.subf %89, %90 : vector<16x128xf32>
    %92 = arith.mulf %73, %88 : vector<16x128xf32>
    %93 = arith.mulf %76, %84 : vector<16x128xf32>
    %94 = arith.addf %92, %93 : vector<16x128xf32>
    %c4_i32 = arith.constant 4 : i32
    %95 = tpu.dynamic_rotate %91 by %c4_i32 dim 1 : vector<16x128xf32>, i32 -> vector<16x128xf32>
    %c4_i32_25 = arith.constant 4 : i32
    %96 = tpu.dynamic_rotate %94 by %c4_i32_25 dim 1 : vector<16x128xf32>, i32 -> vector<16x128xf32>
    %c4_i32_26 = arith.constant 4 : i32
    %97 = vector.broadcast %c4_i32_26 : i32 to vector<1x128xi32>
    %98 = arith.cmpi sge, %40, %97 : vector<1x128xi32>
    %cst_27 = arith.constant 1.000000e+00 : f32
    %99 = vector.shape_cast %98 : vector<1x128xi1> to vector<1x128xi1>
    %100 = vector.broadcast %99 : vector<1x128xi1> to vector<16x128xi1>
    %101 = vector.broadcast %cst_27 : f32 to vector<16x128xf32>
    %102 = arith.select %100, %95, %101 : vector<16x128xi1>, vector<16x128xf32>
    %cst_28 = arith.constant 0.000000e+00 : f32
    %103 = vector.shape_cast %98 : vector<1x128xi1> to vector<1x128xi1>
    %104 = vector.broadcast %103 : vector<1x128xi1> to vector<16x128xi1>
    %105 = vector.broadcast %cst_28 : f32 to vector<16x128xf32>
    %106 = arith.select %104, %96, %105 : vector<16x128xi1>, vector<16x128xf32>
    %107 = arith.mulf %91, %102 : vector<16x128xf32>
    %108 = arith.mulf %94, %106 : vector<16x128xf32>
    %109 = arith.subf %107, %108 : vector<16x128xf32>
    %110 = arith.mulf %91, %106 : vector<16x128xf32>
    %111 = arith.mulf %94, %102 : vector<16x128xf32>
    %112 = arith.addf %110, %111 : vector<16x128xf32>
    %c8_i32 = arith.constant 8 : i32
    %113 = tpu.dynamic_rotate %109 by %c8_i32 dim 1 : vector<16x128xf32>, i32 -> vector<16x128xf32>
    %c8_i32_29 = arith.constant 8 : i32
    %114 = tpu.dynamic_rotate %112 by %c8_i32_29 dim 1 : vector<16x128xf32>, i32 -> vector<16x128xf32>
    %c8_i32_30 = arith.constant 8 : i32
    %115 = vector.broadcast %c8_i32_30 : i32 to vector<1x128xi32>
    %116 = arith.cmpi sge, %40, %115 : vector<1x128xi32>
    %cst_31 = arith.constant 1.000000e+00 : f32
    %117 = vector.shape_cast %116 : vector<1x128xi1> to vector<1x128xi1>
    %118 = vector.broadcast %117 : vector<1x128xi1> to vector<16x128xi1>
    %119 = vector.broadcast %cst_31 : f32 to vector<16x128xf32>
    %120 = arith.select %118, %113, %119 : vector<16x128xi1>, vector<16x128xf32>
    %cst_32 = arith.constant 0.000000e+00 : f32
    %121 = vector.shape_cast %116 : vector<1x128xi1> to vector<1x128xi1>
    %122 = vector.broadcast %121 : vector<1x128xi1> to vector<16x128xi1>
    %123 = vector.broadcast %cst_32 : f32 to vector<16x128xf32>
    %124 = arith.select %122, %114, %123 : vector<16x128xi1>, vector<16x128xf32>
    %125 = arith.mulf %109, %120 : vector<16x128xf32>
    %126 = arith.mulf %112, %124 : vector<16x128xf32>
    %127 = arith.subf %125, %126 : vector<16x128xf32>
    %128 = arith.mulf %109, %124 : vector<16x128xf32>
    %129 = arith.mulf %112, %120 : vector<16x128xf32>
    %130 = arith.addf %128, %129 : vector<16x128xf32>
    %c16_i32 = arith.constant 16 : i32
    %131 = tpu.dynamic_rotate %127 by %c16_i32 dim 1 : vector<16x128xf32>, i32 -> vector<16x128xf32>
    %c16_i32_33 = arith.constant 16 : i32
    %132 = tpu.dynamic_rotate %130 by %c16_i32_33 dim 1 : vector<16x128xf32>, i32 -> vector<16x128xf32>
    %c16_i32_34 = arith.constant 16 : i32
    %133 = vector.broadcast %c16_i32_34 : i32 to vector<1x128xi32>
    %134 = arith.cmpi sge, %40, %133 : vector<1x128xi32>
    %cst_35 = arith.constant 1.000000e+00 : f32
    %135 = vector.shape_cast %134 : vector<1x128xi1> to vector<1x128xi1>
    %136 = vector.broadcast %135 : vector<1x128xi1> to vector<16x128xi1>
    %137 = vector.broadcast %cst_35 : f32 to vector<16x128xf32>
    %138 = arith.select %136, %131, %137 : vector<16x128xi1>, vector<16x128xf32>
    %cst_36 = arith.constant 0.000000e+00 : f32
    %139 = vector.shape_cast %134 : vector<1x128xi1> to vector<1x128xi1>
    %140 = vector.broadcast %139 : vector<1x128xi1> to vector<16x128xi1>
    %141 = vector.broadcast %cst_36 : f32 to vector<16x128xf32>
    %142 = arith.select %140, %132, %141 : vector<16x128xi1>, vector<16x128xf32>
    %143 = arith.mulf %127, %138 : vector<16x128xf32>
    %144 = arith.mulf %130, %142 : vector<16x128xf32>
    %145 = arith.subf %143, %144 : vector<16x128xf32>
    %146 = arith.mulf %127, %142 : vector<16x128xf32>
    %147 = arith.mulf %130, %138 : vector<16x128xf32>
    %148 = arith.addf %146, %147 : vector<16x128xf32>
    %c32_i32 = arith.constant 32 : i32
    %149 = tpu.dynamic_rotate %145 by %c32_i32 dim 1 : vector<16x128xf32>, i32 -> vector<16x128xf32>
    %c32_i32_37 = arith.constant 32 : i32
    %150 = tpu.dynamic_rotate %148 by %c32_i32_37 dim 1 : vector<16x128xf32>, i32 -> vector<16x128xf32>
    %c32_i32_38 = arith.constant 32 : i32
    %151 = vector.broadcast %c32_i32_38 : i32 to vector<1x128xi32>
    %152 = arith.cmpi sge, %40, %151 : vector<1x128xi32>
    %cst_39 = arith.constant 1.000000e+00 : f32
    %153 = vector.shape_cast %152 : vector<1x128xi1> to vector<1x128xi1>
    %154 = vector.broadcast %153 : vector<1x128xi1> to vector<16x128xi1>
    %155 = vector.broadcast %cst_39 : f32 to vector<16x128xf32>
    %156 = arith.select %154, %149, %155 : vector<16x128xi1>, vector<16x128xf32>
    %cst_40 = arith.constant 0.000000e+00 : f32
    %157 = vector.shape_cast %152 : vector<1x128xi1> to vector<1x128xi1>
    %158 = vector.broadcast %157 : vector<1x128xi1> to vector<16x128xi1>
    %159 = vector.broadcast %cst_40 : f32 to vector<16x128xf32>
    %160 = arith.select %158, %150, %159 : vector<16x128xi1>, vector<16x128xf32>
    %161 = arith.mulf %145, %156 : vector<16x128xf32>
    %162 = arith.mulf %148, %160 : vector<16x128xf32>
    %163 = arith.subf %161, %162 : vector<16x128xf32>
    %164 = arith.mulf %145, %160 : vector<16x128xf32>
    %165 = arith.mulf %148, %156 : vector<16x128xf32>
    %166 = arith.addf %164, %165 : vector<16x128xf32>
    %c64_i32 = arith.constant 64 : i32
    %167 = tpu.dynamic_rotate %163 by %c64_i32 dim 1 : vector<16x128xf32>, i32 -> vector<16x128xf32>
    %c64_i32_41 = arith.constant 64 : i32
    %168 = tpu.dynamic_rotate %166 by %c64_i32_41 dim 1 : vector<16x128xf32>, i32 -> vector<16x128xf32>
    %c64_i32_42 = arith.constant 64 : i32
    %169 = vector.broadcast %c64_i32_42 : i32 to vector<1x128xi32>
    %170 = arith.cmpi sge, %40, %169 : vector<1x128xi32>
    %cst_43 = arith.constant 1.000000e+00 : f32
    %171 = vector.shape_cast %170 : vector<1x128xi1> to vector<1x128xi1>
    %172 = vector.broadcast %171 : vector<1x128xi1> to vector<16x128xi1>
    %173 = vector.broadcast %cst_43 : f32 to vector<16x128xf32>
    %174 = arith.select %172, %167, %173 : vector<16x128xi1>, vector<16x128xf32>
    %cst_44 = arith.constant 0.000000e+00 : f32
    %175 = vector.shape_cast %170 : vector<1x128xi1> to vector<1x128xi1>
    %176 = vector.broadcast %175 : vector<1x128xi1> to vector<16x128xi1>
    %177 = vector.broadcast %cst_44 : f32 to vector<16x128xf32>
    %178 = arith.select %176, %168, %177 : vector<16x128xi1>, vector<16x128xf32>
    %179 = arith.mulf %163, %174 : vector<16x128xf32>
    %180 = arith.mulf %166, %178 : vector<16x128xf32>
    %181 = arith.subf %179, %180 : vector<16x128xf32>
    %182 = arith.mulf %163, %178 : vector<16x128xf32>
    %183 = arith.mulf %166, %174 : vector<16x128xf32>
    %184 = arith.addf %182, %183 : vector<16x128xf32>
    %185 = arith.mulf %181, %181 : vector<16x128xf32>
    %186 = arith.mulf %184, %184 : vector<16x128xf32>
    %187 = arith.addf %185, %186 : vector<16x128xf32>
    %cst_45 = arith.constant 1.000000e-30 : f32
    %188 = vector.broadcast %cst_45 : f32 to vector<16x128xf32>
    %189 = arith.maximumf %187, %188 : vector<16x128xf32>
    %190 = math.rsqrt %189 : vector<16x128xf32>
    %191 = arith.mulf %181, %190 : vector<16x128xf32>
    %192 = arith.mulf %184, %190 : vector<16x128xf32>
    %c0_46 = arith.constant 0 : index
    %c0_47 = arith.constant 0 : index
    %193 = vector.load %arg5[%c0_46, %c0_47] : memref<1x128xf32, #tpu.memory_space<vmem>>, vector<1x128xf32>
    %194 = arith.subf %33, %32 : vector<16x128xf32>
    %195 = vector.broadcast %193 : vector<1x128xf32> to vector<16x128xf32>
    %196 = arith.mulf %195, %194 : vector<16x128xf32>
    %197 = arith.addf %32, %196 : vector<16x128xf32>
    %198 = arith.mulf %191, %197 : vector<16x128xf32>
    %c0_48 = arith.constant 0 : index
    %c0_49 = arith.constant 0 : index
    %199 = vector.load %arg6[%c0_48, %c0_49] : memref<16x128xf32, #tpu.memory_space<vmem>>, vector<16x128xf32>
    tpu.vector_store %arg6[%c0_48, %c0_49], %198 {strides = array<i32>} : memref<16x128xf32, #tpu.memory_space<vmem>>, vector<16x128xf32>,
    %200 = arith.mulf %192, %197 : vector<16x128xf32>
    %c0_50 = arith.constant 0 : index
    %c0_51 = arith.constant 0 : index
    %201 = vector.load %arg7[%c0_50, %c0_51] : memref<16x128xf32, #tpu.memory_space<vmem>>, vector<16x128xf32>
    tpu.vector_store %arg7[%c0_50, %c0_51], %200 {strides = array<i32>} : memref<16x128xf32, #tpu.memory_space<vmem>>, vector<16x128xf32>,
    return
  }
  func.func @transform_0(%arg0: i32) -> (i32, i32) {
    %c0_i32 = arith.constant 0 : i32
    %c0_i32_0 = arith.constant 0 : i32
    return %arg0, %c0_i32 : i32, i32
  }
  func.func @transform_1(%arg0: i32) -> (i32, i32) {
    %c0_i32 = arith.constant 0 : i32
    %c0_i32_0 = arith.constant 0 : i32
    return %arg0, %c0_i32 : i32, i32
  }
  func.func @transform_2(%arg0: i32) -> (i32, i32) {
    %c0_i32 = arith.constant 0 : i32
    %c0_i32_0 = arith.constant 0 : i32
    return %arg0, %c0_i32 : i32, i32
  }
  func.func @transform_3(%arg0: i32) -> (i32, i32) {
    %c0_i32 = arith.constant 0 : i32
    %c0_i32_0 = arith.constant 0 : i32
    return %arg0, %c0_i32 : i32, i32
  }
  func.func @transform_4(%arg0: i32) -> (i32, i32) {
    %c0_i32 = arith.constant 0 : i32
    %c0_i32_0 = arith.constant 0 : i32
    %c0_i32_1 = arith.constant 0 : i32
    return %c0_i32, %c0_i32_0 : i32, i32
  }
  func.func @transform_5(%arg0: i32) -> (i32, i32) {
    %c0_i32 = arith.constant 0 : i32
    %c0_i32_0 = arith.constant 0 : i32
    return %arg0, %c0_i32 : i32, i32
  }
  func.func @transform_6(%arg0: i32) -> (i32, i32) {
    %c0_i32 = arith.constant 0 : i32
    %c0_i32_0 = arith.constant 0 : i32
    return %arg0, %c0_i32 : i32, i32
  }
}

</mosaic_0001>

<bundles_post_ra>
// kernel: custom-call.1
= control target key start
LH: loop header
LB: loop body
LE: loop exit
PB: predicated region body
PF: predicated region fallthrough
CT: control target
= control target key end

     0   :  { %s59_s0 = inlined_call_operand.hbm [shape: c64[2,16,16], index: 0, kind: input, shape index: {}]   ;;  %s60_s1 = inlined_call_operand.vmem [shape: f32[2,16,16], index: 1, kind: output, shape index: {}]  }
   0x1   :  { %s2_s8 = scalar_lea.hbm %s59_s0, 512 }
   0x2   :  { %3 = vsyncpa [#allocation0], 0  ;;  %s4_s11 = sshll.u32 %s60_s1, 4  ;;  %s34_s14 = scalar_lea.hbm %s59_s0, 1024  ;;  %s5_s11 = int_to_ptr.vmem [resolvable:$true] %s4_s11 }
   0x3   :  { %p11_p0 = scmp.ne.s32.totalorder %s2_s8, %s34_s14  ;;  %p13_p1 = scmp.lt.u32.totalorder %s2_s8, %s59_s0 }
   0x4   :  { %p14_p2 = scmp.lt.u32.totalorder %s34_s14, %s34_s14  ;;  %p16_p4 = scmp.lt.u32.totalorder %s34_s14, %s2_s8 }
   0x6   :  { %p15_p3 = por %p14_p2, %p13_p1 }
   0x8   :  { %p17_p5 = por %p16_p4, %p15_p3 }
   0xa   :  { %p18_p6 = pnand %p17_p5, %p11_p0 }
   0xc   :  { %21 = shalt.err (!%p18_p6)  }
   0xd   :  { %s22_s17 = scalar_lea.vmem %s5_s11, 512  ;;  %p27_p8 = scmp.lt.s32.totalorder %s5_s11, %s5_s11 }
   0xe   :  { %p23_p7 = scmp.ne.s32.totalorder %s5_s11, %s22_s17  ;;  %p28_p9 = scmp.lt.s32.totalorder %s22_s17, %s22_s17 }
  0x10   :  { %p29_p10 = por %p28_p9, %p27_p8 }
  0x12   :  { %p30_p11 = pnand %p29_p10, %p23_p7 }
  0x14   :  { %33 = shalt.err (!%p30_p11)  }
  0x15   :  { %7 = dma.hbm_to_vmem [thread:$0]  %s2_s8, 512, %s5_s11, [#allocation0] }
  0x16   :  { %35 = dma.done.wait [#allocation0], 512  }
  0x17   :  { %36 = vsyncadd [#allocation0], 4294966784 }
  0x18   :  { %9 = vsyncpa [#allocation0], 1 }

// kernel: custom-call
= control target key start
LH: loop header
LB: loop body
LE: loop exit
PB: predicated region body
PF: predicated region fallthrough
CT: control target
= control target key end

     0   :  { %2 = vsyncpa [#allocation0], 0  ;;  %s61_s0 = inlined_call_operand.hbm [shape: c64[2,16,16], index: 0, kind: input, shape index: {}]   ;;  %s62_s1 = inlined_call_operand.vmem [shape: f32[2,16,16], index: 1, kind: output, shape index: {}]  }
   0x1   :  { %s3_s8 = sshll.u32 %s62_s1, 4  ;;  %s9_s11 = scalar_lea.hbm %s61_s0, 512  ;;  %s4_s8 = int_to_ptr.vmem [resolvable:$true] %s3_s8 }
   0x2   :  { %p10_p0 = scmp.ne.s32.totalorder %s61_s0, %s9_s11  ;;  %s11_s16 = scalar_lea.hbm %s61_s0, 1024 }
   0x3   :  { %p12_p1 = scmp.lt.u32.totalorder %s11_s16, %s9_s11  ;;  %p13_p2 = scmp.lt.u32.totalorder %s9_s11, %s61_s0 }
   0x5   :  { %p14_p3 = por %p13_p2, %p12_p1 }
   0x7   :  { %p15_p4 = pnand %p14_p3, %p10_p0 }
   0x9   :  { %18 = shalt.err (!%p15_p4)  }
   0xa   :  { %s19_s1 = scalar_lea.vmem %s4_s8, 512  ;;  %p24_p6 = scmp.lt.s32.totalorder %s4_s8, %s4_s8 }
   0xb   :  { %p20_p5 = scmp.ne.s32.totalorder %s4_s8, %s19_s1  ;;  %p25_p7 = scmp.lt.s32.totalorder %s19_s1, %s19_s1 }
   0xd   :  { %p26_p8 = por %p25_p7, %p24_p6 }
   0xf   :  { %p27_p9 = pnand %p26_p8, %p20_p5 }
  0x11   :  { %30 = shalt.err (!%p27_p9)  }
  0x12   :  { %6 = dma.hbm_to_vmem [thread:$0]  %s61_s0, 512, %s4_s8, [#allocation0] }
  0x13   :  { %31 = dma.done.wait [#allocation0], 512  }
  0x14   :  { %32 = vsyncadd [#allocation0], 4294966784 }
  0x15   :  { %8 = vsyncpa [#allocation0], 1 }

// kernel: _time_stretch_padded.1
= control target key start
LH: loop header
LB: loop body
LE: loop exit
PB: predicated region body
PF: predicated region fallthrough
CT: control target
= control target key end

     0   :  { %12 = vsyncpa [#allocation3], 0  ;;  %s1287_s0 = inlined_call_operand.vmem [shape: f32[32,128], index: 0, kind: input, shape index: {}]   ;;  %s1288_s1 = inlined_call_operand.vmem [shape: f32[32,128], index: 1, kind: input, shape index: {}]   ;;  %s1289_s2 = inlined_call_operand.vmem [shape: f32[32,128], index: 2, kind: input, shape index: {}]   ;;  %s1290_s3 = inlined_call_operand.vmem [shape: f32[32,128], index: 3, kind: input, shape index: {}]   ;;  %s1291_s4 = inlined_call_operand.vmem [shape: f32[1,128], index: 4, kind: input, shape index: {}]   ;;  %s1292_s5 = inlined_call_operand.hbm [shape: f32[32,128], index: 5, kind: output, shape index: {0}]   ;;  %s1293_s6 = inlined_call_operand.hbm [shape: f32[32,128], index: 6, kind: output, shape index: {1}]  }
   0x1   :  { %14 = vsyncpa [#allocation3 + $0x1], 0 }
   0x2   :  { %15 = vsyncpa [#allocation5], 0 }
   0x3   :  { %17 = vsyncpa [#allocation5 + $0x1], 0  ;;  %s1055_s21 = smov 0   ;;  %s1057_s22 = smov 0  }
   0x4   :  { %s1059_s23 = smov 0   ;;  %s1061_s24 = smov 0  }
   0x5 LB: > { %s1076_s25 = sadd.s32 4294967295, %s1007_s24   ;;  %s821_s26 = sadd.s32 4294967294, %s1007_s24   ;;  %s1007_s24 = sphi %s1061_s24, %s1299_s24   ;;  %s1003_s23 = sphi %s1059_s23, %s1298_s23   ;;  %s999_s22 = sphi %s1057_s22, %s1297_s22   ;;  %s995_s21 = sphi %s1055_s21, %s1296_s21  }
   0x6   : > { %s1080_s27 = sadd.s32 1, %s1007_s24   ;;  %s155_s28 = sadd.s32 1, %s1003_s23 }
   0x7   : > { %s152_s29 = ssub.s32 %s1007_s24, %s1080_s27  ;;  %p165_p0 = scmp.ne.s32.totalorder %s1003_s23, %s999_s22 }
   0x8   : > { %p153_p1 = scmp.eq.s32.totalorder %s152_s29, 0  ;;  %p166_p2 = scmp.eq.s32.totalorder %s1076_s25, 1 }
   0x9   : > { %p171_p3 = scmp.ne.s32.totalorder %s999_s22, %s995_s21  ;;  %p172_p4 = scmp.eq.s32.totalorder %s821_s26, 1 }
   0xa   : > { %s1091_s30 = scalar_select %p153_p1, %s1003_s23, %s155_s28  }
   0xb   : > { %p1093_p5 = por %p166_p2, %p165_p0  ;;  %p1097_p6 = por %p172_p4, %p171_p3 }
   0xc   : > { %p824_p7 = scmp.ge.s32.totalorder %s1007_s24, 1  ;;  %p255_p8 = scmp.lt.s32.totalorder %s1007_s24, 3 }
   0xe   : > { %p256_p9 = pnand %p824_p7, %p255_p8 }
   0xf   : > { %s827_s9 = sshll.u32 (!%p256_p9), %s1076_s25, 1  ;;  %v1009_v0 = vmov (!%p256_p9), 0   ;;  %s1010_s29 = smov (!%p256_p9), 1   ;;  %v395_v57 = vlaneseq (!%p256_p9) }
  0x10   : > { %259 = sbr.rel (%p256_p9) target bundleno = 1112 (0x458), region = 40  ;;  %900 = vset.pattern.permute.xlu1 (!%p256_p9), %v1009_v0  ;;  %899 = vset.pattern.permute.xlu0 (!%p256_p9), %v1009_v0  ;;  %p306_p10 = scmp.lt.s32.totalorder (!%p256_p9), %s827_s9, 3 }
  0x11   : > { %v1172_v60 = vand.u32 (!%p256_p9), 127, %v395_v57  ;;  %s1013_s11 = smov (!%p256_p9), 8   ;;  %s1014_s12 = smov (!%p256_p9), 16  }
  0x12   : > { %s1016_s14 = smov (!%p256_p9), 64   ;;  %s1195_s15 = sand.u32 (!%p256_p9), 1, %s999_s22  }
  0x13   : > { %vm397_vm4 = vcmp.eq.s32.totalorder (!%p256_p9), %v1172_v60, 0  ;;  %vm440_vm5 = vcmp.ge.s32.totalorder (!%p256_p9), %v1172_v60, 1  ;;  %vm467_vm6 = vcmp.ge.s32.totalorder (!%p256_p9), %v1172_v60, 2  ;;  %vm494_vm7 = vcmp.ge.s32.totalorder (!%p256_p9), %v1172_v60, 4  ;;  %s825_s18 = sshll.u32 (!%p256_p9), %s1195_s15, 4 }
  0x14   : > { %vm521_vm8 = vcmp.ge.s32.totalorder (!%p256_p9), %v1172_v60, 8  ;;  %vm548_vm9 = vcmp.ge.s32.totalorder (!%p256_p9), %v1172_v60, 16  ;;  %vm575_vm10 = vcmp.ge.s32.totalorder (!%p256_p9), %v1172_v60, 32  ;;  %vm602_vm11 = vcmp.ge.s32.totalorder (!%p256_p9), %v1172_v60, 64  ;;  %s297_s20 = scalar_lea.vmem (!%p256_p9), [#allocation2], %s825_s18 }
  0x15   : > { %s675_s26 = sshll.u32 (!%p256_p9), %s297_s20, 4  ;;  %s1207_s26 = int_to_ptr.vmem [resolvable:$true] %s675_s26 }
  0x16   : > { %s913_s17 = scalar_lea.vmem (!%p256_p9), %s1207_s26, 256 }
  0x17   : > { %s1301_s9 = smov (!%p306_p10, %s827_s9), 3  ;;  %p914_p11 = scmp.ne.s32.totalorder %s1207_s26, %s913_s17 }
  0x18   : > { %s828_s10 = sshll.u32 %s1301_s9, 3  ;;  %s1011_s9 = smov 2  }
  0x19   : > { %s309_s13 = scalar_lea.vmem %s1287_s0, %s828_s10  ;;  %s315_s16 = scalar_lea.vmem %s1288_s1, %s828_s10 }
  0x1a   : > { %s321_s19 = scalar_lea.vmem %s1289_s2, %s828_s10  ;;  %s327_s28 = scalar_lea.vmem %s1290_s3, %s828_s10  ;;  %v331_v1 = vld [vmem:[%s309_s13] sm:$0xff]  ;;  %v332_v3 = vld [vmem:[%s309_s13 + $0x8] sm:$0xff] }
  0x1b   : > { %v333_v2 = vld [vmem:[%s315_s16] sm:$0xff]  ;;  %v339_v6 = vmul.f32 %v331_v1, %v331_v1  ;;  %v334_v8 = vld [vmem:[%s315_s16 + $0x8] sm:$0xff]  ;;  %v340_v9 = vmul.f32 %v332_v3, %v332_v3  ;;  %s1012_s10 = smov 4   ;;  %s1015_s13 = smov 32  }
  0x1c   : > { %v335_v4 = vld [vmem:[%s321_s19] sm:$0xff]  ;;  %v341_v7 = vmul.f32 %v333_v2, %v333_v2  ;;  %v336_v12 = vld [vmem:[%s321_s19 + $0x8] sm:$0xff]  ;;  %v342_v14 = vmul.f32 %v334_v8, %v334_v8  ;;  %s844_s19 = sshll.u32 %s1076_s25, 8  ;;  %s657_s16 = scalar_lea.sflag [#allocation3], %s1195_s15 }
  0x1d   : > { %v337_v5 = vld [vmem:[%s327_s28] sm:$0xff]  ;;  %v345_v10 = vmul.f32 %v335_v4, %v335_v4  ;;  %v338_v13 = vld [vmem:[%s327_s28 + $0x8] sm:$0xff]  ;;  %v346_v16 = vmul.f32 %v336_v12, %v336_v12  ;;  %s304_s28 = scalar_lea.vmem [#allocation4], %s825_s18  ;;  %p915_p12 = pnand %p914_p11, %p1093_p5 }
  0x1e   : > { %v347_v11 = vmul.f32 %v337_v5, %v337_v5  ;;  %v1116_v15 = vadd.f32 %v341_v7, %v339_v6  ;;  %v348_v17 = vmul.f32 %v338_v13, %v338_v13  ;;  %v1120_v19 = vadd.f32 %v342_v14, %v340_v9  ;;  %s1017_s18 = smov [#allocation2]  }
  0x1f   : > { %p916_p13 = pneg %p915_p12 }
  0x20   : > { %v1118_v18 = vadd.f32 %v347_v11, %v345_v10  ;;  %vm351_vm0 = vcmp.gt.f32.partialorder %v1116_v15, 0.0  ;;  %v1123_v20 = vadd.f32 %v348_v17, %v346_v16  ;;  %vm352_vm2 = vcmp.gt.f32.partialorder %v1120_v19, 0.0 }
  0x21   : > { %v355_v21 = vsel %vm351_vm0, %v1116_v15, 1.0  ;;  %v356_v23 = vsel %vm352_vm2, %v1120_v19, 1.0 }
  0x22   : > { %vm353_vm1 = vcmp.gt.f32.partialorder %v1118_v18, 0.0  ;;  %901 = vrsqrt.f32 %v355_v21  ;;  %vm354_vm3 = vcmp.gt.f32.partialorder %v1123_v20, 0.0 }
  0x23   : > { %v359_v22 = vsel %vm353_vm1, %v1118_v18, 1.0  ;;  %v360_v24 = vsel %vm354_vm3, %v1123_v20, 1.0 }
  0x24   : > { %903 = vrsqrt.f32 %v359_v22 }
  0x25   : > { %905 = vrsqrt.f32 %v356_v23 }
  0x26   : > { %907 = vrsqrt.f32 %v360_v24 }
  0x2c   : > { %v1140_v25 = vpop.eup %901 }
  0x2d   : > { %v367_v27 = vmul.f32 %v1140_v25, %v333_v2  ;;  %v363_v28 = vmul.f32 %v1140_v25, %v331_v1 }
  0x2e   : > { %v1142_v26 = vpop.eup %903 }
  0x2f   : > { %v1146_v29 = vpop.eup %905  ;;  %v371_v30 = vmul.f32 %v1142_v26, %v335_v4  ;;  %v375_v31 = vmul.f32 %v1142_v26, %v337_v5  ;;  %v369_v33 = vsel %vm351_vm0, %v367_v27, 0.0  ;;  %v365_v34 = vsel %vm351_vm0, %v363_v28, 1.0 }
  0x30   : > { %v1150_v32 = vpop.eup %907  ;;  %v368_v35 = vmul.f32 %v1146_v29, %v334_v8  ;;  %v364_v36 = vmul.f32 %v1146_v29, %v332_v3  ;;  %422 = vperm.xlu1 %900, %v369_v33   ;;  %406 = vperm.xlu0 %899, %v365_v34  }
  0x31   : > { %v373_v37 = vsel %vm353_vm1, %v371_v30, 1.0  ;;  %v377_v38 = vsel %vm353_vm1, %v375_v31, 0.0  ;;  %v372_v39 = vmul.f32 %v1150_v32, %v336_v12  ;;  %v376_v40 = vmul.f32 %v1150_v32, %v338_v13 }
  0x32   : > { %v385_v41 = vmul.f32 %v377_v38, %v369_v33  ;;  %v383_v42 = vmul.f32 %v373_v37, %v365_v34  ;;  %v370_v43 = vsel %vm352_vm2, %v368_v35, 0.0  ;;  %v366_v46 = vsel %vm352_vm2, %v364_v36, 1.0 }
  0x33   : > { %v374_v44 = vsel %vm354_vm3, %v372_v39, 1.0  ;;  %v378_v45 = vsel %vm354_vm3, %v376_v40, 0.0  ;;  %v391_v47 = vmul.f32 %v373_v37, %v369_v33  ;;  %v389_v48 = vmul.f32 %v377_v38, %v365_v34 }
  0x34   : > { %v386_v49 = vmul.f32 %v378_v45, %v370_v43  ;;  %v384_v50 = vmul.f32 %v374_v44, %v366_v46  ;;  %v392_v51 = vmul.f32 %v374_v44, %v370_v43  ;;  %427 = vperm.xlu1 %900, %v370_v43   ;;  %v390_v52 = vmul.f32 %v378_v45, %v366_v46 }
  0x35   : > { %411 = vperm.xlu0 %899, %v366_v46   ;;  %v387_v53 = vadd.f32 %v385_v41, %v383_v42  ;;  %v393_v56 = vsub.f32 %v389_v48, %v391_v47 }
  0x36   : > { %v388_v54 = vadd.f32 %v386_v49, %v384_v50  ;;  %v394_v55 = vsub.f32 %v390_v52, %v392_v51 }
  0x38   : > { %400 = vrot.lane.b32.xlu1 %v388_v54, %s1010_s29 }
  0x39   : > { %398 = vrot.lane.b32.xlu0 %v387_v53, %s1010_s29 }
  0x3c   : > { %418 = vrot.lane.b32.xlu1 %v394_v55, %s1010_s29 }
  0x3d   : > { %416 = vrot.lane.b32.xlu0 %v393_v56, %s1010_s29 }
  0xaf   : > { %v423_v58 = vpop.permute.xlu1 %422  ;;  %v407_v59 = vpop.permute.xlu0 %406 }
  0xb3   : > { %v428_v61 = vpop.permute.xlu1 %427 }
  0xb4   : > { %v412_v62 = vpop.permute.xlu0 %411 }
  0xb7   : > { %v401_v63 = vpop.permute.xlu1 %400 }
  0xb8   : > { %v399_v0 = vpop.permute.xlu0 %398  ;;  %v415_v1 = vsel %vm397_vm4, %v412_v62, %v401_v63 }
  0xb9   : > { %v414_v2 = vsel %vm397_vm4, %v407_v59, %v399_v0  ;;  %434 = vrot.lane.b32.xlu1 %v415_v1, %s1010_s29 }
  0xba   : > { %432 = vrot.lane.b32.xlu0 %v414_v2, %s1010_s29 }
  0xbb   : > { %v419_v3 = vpop.permute.xlu1 %418 }
  0xbc   : > { %v417_v4 = vpop.permute.xlu0 %416  ;;  %v431_v5 = vsel %vm397_vm4, %v428_v61, %v419_v3 }
  0xbd   : > { %v430_v6 = vsel %vm397_vm4, %v423_v58, %v417_v4  ;;  %438 = vrot.lane.b32.xlu1 %v431_v5, %s1010_s29 }
  0xbe   : > { %436 = vrot.lane.b32.xlu0 %v430_v6, %s1010_s29  ;;  %s691_s29 = sshll.u32 %s304_s28, 4  ;;  %s1214_s29 = int_to_ptr.vmem [resolvable:$true] %s691_s29 }
 0x12b   : > { %v435_v7 = vpop.permute.xlu1 %434 }
 0x12c   : > { %v433_v8 = vpop.permute.xlu0 %432  ;;  %v444_v9 = vsel %vm440_vm5, %v435_v7, 1.0 }
 0x12d   : > { %v443_v10 = vsel %vm440_vm5, %v433_v8, 1.0  ;;  %v448_v16 = vmul.f32 %v444_v9, %v415_v1  ;;  %v456_v30 = vmul.f32 %v444_v9, %v431_v5 }
 0x12e   : > { %v447_v17 = vmul.f32 %v443_v10, %v414_v2  ;;  %v455_v31 = vmul.f32 %v443_v10, %v430_v6 }
 0x12f   : > { %v439_v11 = vpop.permute.xlu1 %438 }
 0x130   : > { %v437_v12 = vpop.permute.xlu0 %436  ;;  %v446_v13 = vsel %vm440_vm5, %v439_v11, 0.0 }
 0x131   : > { %v445_v14 = vsel %vm440_vm5, %v437_v12, 0.0  ;;  %v450_v21 = vmul.f32 %v446_v13, %v431_v5  ;;  %v454_v24 = vmul.f32 %v446_v13, %v415_v1 }
 0x132   : > { %v449_v22 = vmul.f32 %v445_v14, %v430_v6  ;;  %v453_v28 = vmul.f32 %v445_v14, %v414_v2 }
 0x133   : > { %v452_v23 = vsub.f32 %v448_v16, %v450_v21  ;;  %v458_v33 = vadd.f32 %v456_v30, %v454_v24 }
 0x134   : > { %v451_v27 = vsub.f32 %v447_v17, %v449_v22  ;;  %v457_v34 = vadd.f32 %v455_v31, %v453_v28 }
 0x135   : > { %461 = vrot.lane.b32.xlu1 %v452_v23, %s1011_s9 }
 0x136   : > { %459 = vrot.lane.b32.xlu0 %v451_v27, %s1011_s9 }
 0x139   : > { %465 = vrot.lane.b32.xlu1 %v458_v33, %s1011_s9 }
 0x13a   : > { %463 = vrot.lane.b32.xlu0 %v457_v34, %s1011_s9  ;;  %s917_s9 = sshll.u32 %s1017_s18, 4  ;;  %s918_s9 = int_to_ptr.vmem [resolvable:$false] %s917_s9 }
 0x13b   : > { %p920_p0 = scmp.lt.s32.totalorder %s1207_s26, %s918_s9 }
 0x1a7   : > { %v462_v35 = vpop.permute.xlu1 %461 }
 0x1a8   : > { %v460_v36 = vpop.permute.xlu0 %459  ;;  %v471_v37 = vsel %vm467_vm6, %v462_v35, 1.0 }
 0x1a9   : > { %v470_v38 = vsel %vm467_vm6, %v460_v36, 1.0  ;;  %v475_v43 = vmul.f32 %v471_v37, %v452_v23  ;;  %v483_v51 = vmul.f32 %v471_v37, %v458_v33 }
 0x1aa   : > { %v474_v44 = vmul.f32 %v470_v38, %v451_v27  ;;  %v482_v52 = vmul.f32 %v470_v38, %v457_v34 }
 0x1ab   : > { %v466_v39 = vpop.permute.xlu1 %465 }
 0x1ac   : > { %v464_v40 = vpop.permute.xlu0 %463  ;;  %v473_v41 = vsel %vm467_vm6, %v466_v39, 0.0 }
 0x1ad   : > { %v472_v42 = vsel %vm467_vm6, %v464_v40, 0.0  ;;  %v477_v45 = vmul.f32 %v473_v41, %v458_v33  ;;  %v481_v48 = vmul.f32 %v473_v41, %v452_v23 }
 0x1ae   : > { %v476_v46 = vmul.f32 %v472_v42, %v457_v34  ;;  %v480_v50 = vmul.f32 %v472_v42, %v451_v27 }
 0x1af   : > { %v479_v47 = vsub.f32 %v475_v43, %v477_v45  ;;  %v485_v53 = vadd.f32 %v483_v51, %v481_v48 }
 0x1b0   : > { %v478_v49 = vsub.f32 %v474_v44, %v476_v46  ;;  %v484_v54 = vadd.f32 %v482_v52, %v480_v50 }
 0x1b1   : > { %488 = vrot.lane.b32.xlu1 %v479_v47, %s1012_s10 }
 0x1b2   : > { %486 = vrot.lane.b32.xlu0 %v478_v49, %s1012_s10 }
 0x1b5   : > { %492 = vrot.lane.b32.xlu1 %v485_v53, %s1012_s10 }
 0x1b6   : > { %490 = vrot.lane.b32.xlu0 %v484_v54, %s1012_s10  ;;  %s919_s10 = scalar_lea.vmem %s918_s9, 512 }
 0x1b7   : > { %p921_p1 = scmp.lt.s32.totalorder %s919_s10, %s913_s17 }
 0x1b9   : > { %p922_p2 = por %p921_p1, %p920_p0 }
 0x1bb   : > { %p923_p3 = pnand %p922_p2, %p916_p13 }
 0x223   : > { %v489_v55 = vpop.permute.xlu1 %488 }
 0x224   : > { %v487_v56 = vpop.permute.xlu0 %486  ;;  %v498_v57 = vsel %vm494_vm7, %v489_v55, 1.0 }
 0x225   : > { %v497_v58 = vsel %vm494_vm7, %v487_v56, 1.0  ;;  %v502_v0 = vmul.f32 %v498_v57, %v479_v47  ;;  %v510_v8 = vmul.f32 %v498_v57, %v485_v53 }
 0x226   : > { %v501_v1 = vmul.f32 %v497_v58, %v478_v49  ;;  %v509_v9 = vmul.f32 %v497_v58, %v484_v54 }
 0x227   : > { %v493_v59 = vpop.permute.xlu1 %492 }
 0x228   : > { %v491_v61 = vpop.permute.xlu0 %490  ;;  %v500_v62 = vsel %vm494_vm7, %v493_v59, 0.0 }
 0x229   : > { %v499_v63 = vsel %vm494_vm7, %v491_v61, 0.0  ;;  %v504_v2 = vmul.f32 %v500_v62, %v485_v53  ;;  %v508_v5 = vmul.f32 %v500_v62, %v479_v47 }
 0x22a   : > { %v503_v3 = vmul.f32 %v499_v63, %v484_v54  ;;  %v507_v7 = vmul.f32 %v499_v63, %v478_v49 }
 0x22b   : > { %v506_v4 = vsub.f32 %v502_v0, %v504_v2  ;;  %v512_v10 = vadd.f32 %v510_v8, %v508_v5 }
 0x22c   : > { %v505_v6 = vsub.f32 %v501_v1, %v503_v3  ;;  %v511_v11 = vadd.f32 %v509_v9, %v507_v7 }
 0x22d   : > { %515 = vrot.lane.b32.xlu1 %v506_v4, %s1013_s11 }
 0x22e   : > { %513 = vrot.lane.b32.xlu0 %v505_v6, %s1013_s11 }
 0x231   : > { %519 = vrot.lane.b32.xlu1 %v512_v10, %s1013_s11 }
 0x232   : > { %517 = vrot.lane.b32.xlu0 %v511_v11, %s1013_s11 }
 0x29f   : > { %v516_v12 = vpop.permute.xlu1 %515 }
 0x2a0   : > { %v514_v13 = vpop.permute.xlu0 %513  ;;  %v525_v14 = vsel %vm521_vm8, %v516_v12, 1.0 }
 0x2a1   : > { %v524_v16 = vsel %vm521_vm8, %v514_v13, 1.0  ;;  %v529_v24 = vmul.f32 %v525_v14, %v506_v4  ;;  %v537_v36 = vmul.f32 %v525_v14, %v512_v10 }
 0x2a2   : > { %v528_v27 = vmul.f32 %v524_v16, %v505_v6  ;;  %v536_v37 = vmul.f32 %v524_v16, %v511_v11 }
 0x2a3   : > { %v520_v17 = vpop.permute.xlu1 %519 }
 0x2a4   : > { %v518_v21 = vpop.permute.xlu0 %517  ;;  %v527_v22 = vsel %vm521_vm8, %v520_v17, 0.0 }
 0x2a5   : > { %v526_v23 = vsel %vm521_vm8, %v518_v21, 0.0  ;;  %v531_v28 = vmul.f32 %v527_v22, %v512_v10  ;;  %v535_v33 = vmul.f32 %v527_v22, %v506_v4 }
 0x2a6   : > { %v530_v30 = vmul.f32 %v526_v23, %v511_v11  ;;  %v534_v35 = vmul.f32 %v526_v23, %v505_v6 }
 0x2a7   : > { %v533_v31 = vsub.f32 %v529_v24, %v531_v28  ;;  %v539_v38 = vadd.f32 %v537_v36, %v535_v33 }
 0x2a8   : > { %v532_v34 = vsub.f32 %v528_v27, %v530_v30  ;;  %v538_v39 = vadd.f32 %v536_v37, %v534_v35 }
 0x2a9   : > { %542 = vrot.lane.b32.xlu1 %v533_v31, %s1014_s12 }
 0x2aa   : > { %540 = vrot.lane.b32.xlu0 %v532_v34, %s1014_s12 }
 0x2ad   : > { %546 = vrot.lane.b32.xlu1 %v539_v38, %s1014_s12 }
 0x2ae   : > { %544 = vrot.lane.b32.xlu0 %v538_v39, %s1014_s12  ;;  %s1205_s12 = scalar_lea.hbm %s1292_s5, %s844_s19 }
 0x31b   : > { %v543_v40 = vpop.permute.xlu1 %542 }
 0x31c   : > { %v541_v41 = vpop.permute.xlu0 %540  ;;  %v552_v42 = vsel %vm548_vm9, %v543_v40, 1.0 }
 0x31d   : > { %v551_v43 = vsel %vm548_vm9, %v541_v41, 1.0  ;;  %v556_v48 = vmul.f32 %v552_v42, %v533_v31  ;;  %v564_v56 = vmul.f32 %v552_v42, %v539_v38 }
 0x31e   : > { %v555_v49 = vmul.f32 %v551_v43, %v532_v34  ;;  %v563_v57 = vmul.f32 %v551_v43, %v538_v39 }
 0x31f   : > { %v547_v44 = vpop.permute.xlu1 %546 }
 0x320   : > { %v545_v45 = vpop.permute.xlu0 %544  ;;  %v554_v46 = vsel %vm548_vm9, %v547_v44, 0.0 }
 0x321   : > { %v553_v47 = vsel %vm548_vm9, %v545_v45, 0.0  ;;  %v558_v50 = vmul.f32 %v554_v46, %v539_v38  ;;  %v562_v53 = vmul.f32 %v554_v46, %v533_v31 }
 0x322   : > { %v557_v51 = vmul.f32 %v553_v47, %v538_v39  ;;  %v561_v55 = vmul.f32 %v553_v47, %v532_v34 }
 0x323   : > { %v560_v52 = vsub.f32 %v556_v48, %v558_v50  ;;  %v566_v58 = vadd.f32 %v564_v56, %v562_v53  ;;  %v380_v50 = vmul.f32 %v1146_v29, %v1120_v19  ;;  %v379_v53 = vmul.f32 %v1140_v25, %v1116_v15  ;;  %v835_v19 = vld [vmem:[%s1291_s4] ss:$0 sm:$0xff] }
 0x324   : > { %v559_v54 = vsub.f32 %v555_v49, %v557_v51  ;;  %v565_v59 = vadd.f32 %v563_v57, %v561_v55  ;;  %v382_v51 = vmul.f32 %v1150_v32, %v1123_v20 }
 0x325   : > { %569 = vrot.lane.b32.xlu1 %v560_v52, %s1015_s13 }
 0x326   : > { %567 = vrot.lane.b32.xlu0 %v559_v54, %s1015_s13  ;;  %v637_v56 = vsub.f32 %v382_v51, %v380_v50 }
 0x328   : > { %v645_v29 = vmul.f32 %v835_v19, %v637_v56 }
 0x329   : > { %573 = vrot.lane.b32.xlu1 %v566_v58, %s1015_s13 }
 0x32a   : > { %571 = vrot.lane.b32.xlu0 %v565_v59, %s1015_s13  ;;  %v647_v57 = vadd.f32 %v645_v29, %v380_v50 }
 0x397   : > { %v570_v61 = vpop.permute.xlu1 %569 }
 0x398   : > { %v568_v62 = vpop.permute.xlu0 %567  ;;  %v579_v63 = vsel %vm575_vm10, %v570_v61, 1.0 }
 0x399   : > { %v578_v0 = vsel %vm575_vm10, %v568_v62, 1.0  ;;  %v583_v5 = vmul.f32 %v579_v63, %v560_v52  ;;  %v591_v13 = vmul.f32 %v579_v63, %v566_v58 }
 0x39a   : > { %v582_v6 = vmul.f32 %v578_v0, %v559_v54  ;;  %v590_v14 = vmul.f32 %v578_v0, %v565_v59 }
 0x39b   : > { %v574_v1 = vpop.permute.xlu1 %573 }
 0x39c   : > { %v572_v2 = vpop.permute.xlu0 %571  ;;  %v581_v3 = vsel %vm575_vm10, %v574_v1, 0.0 }
 0x39d   : > { %v580_v4 = vsel %vm575_vm10, %v572_v2, 0.0  ;;  %v585_v7 = vmul.f32 %v581_v3, %v566_v58  ;;  %v589_v10 = vmul.f32 %v581_v3, %v560_v52 }
 0x39e   : > { %v584_v8 = vmul.f32 %v580_v4, %v565_v59  ;;  %v588_v12 = vmul.f32 %v580_v4, %v559_v54  ;;  %v381_v54 = vmul.f32 %v1142_v26, %v1118_v18 }
 0x39f   : > { %v587_v9 = vsub.f32 %v583_v5, %v585_v7  ;;  %v593_v16 = vadd.f32 %v591_v13, %v589_v10 }
 0x3a0   : > { %v586_v11 = vsub.f32 %v582_v6, %v584_v8  ;;  %v592_v17 = vadd.f32 %v590_v14, %v588_v12  ;;  %v636_v20 = vsub.f32 %v381_v54, %v379_v53 }
 0x3a1   : > { %596 = vrot.lane.b32.xlu1 %v587_v9, %s1016_s14 }
 0x3a2   : > { %594 = vrot.lane.b32.xlu0 %v586_v11, %s1016_s14  ;;  %v644_v32 = vmul.f32 %v835_v19, %v636_v20 }
 0x3a4   : > { %v646_v25 = vadd.f32 %v644_v32, %v379_v53 }
 0x3a5   : > { %600 = vrot.lane.b32.xlu1 %v593_v16, %s1016_s14 }
 0x3a6   : > { %598 = vrot.lane.b32.xlu0 %v592_v17, %s1016_s14  ;;  %s1212_s14 = scalar_lea.hbm %s1293_s6, %s844_s19 }
 0x413   : > { %v597_v21 = vpop.permute.xlu1 %596 }
 0x414   : > { %v595_v22 = vpop.permute.xlu0 %594  ;;  %v606_v23 = vsel %vm602_vm11, %v597_v21, 1.0 }
 0x415   : > { %v605_v24 = vsel %vm602_vm11, %v595_v22, 1.0  ;;  %v610_v27 = vmul.f32 %v606_v23, %v587_v9  ;;  %v618_v28 = vmul.f32 %v606_v23, %v593_v16 }
 0x416   : > { %v609_v33 = vmul.f32 %v605_v24, %v586_v11  ;;  %v617_v34 = vmul.f32 %v605_v24, %v592_v17 }
 0x417   : > { %v601_v30 = vpop.permute.xlu1 %600 }
 0x418   : > { %v599_v31 = vpop.permute.xlu0 %598  ;;  %v608_v35 = vsel %vm602_vm11, %v601_v30, 0.0 }
 0x419   : > { %v607_v36 = vsel %vm602_vm11, %v599_v31, 0.0  ;;  %v612_v37 = vmul.f32 %v608_v35, %v593_v16  ;;  %v616_v38 = vmul.f32 %v608_v35, %v587_v9 }
 0x41a   : > { %v611_v39 = vmul.f32 %v607_v36, %v592_v17  ;;  %v615_v40 = vmul.f32 %v607_v36, %v586_v11 }
 0x41b   : > { %v614_v41 = vsub.f32 %v610_v27, %v612_v37  ;;  %v620_v42 = vadd.f32 %v618_v28, %v616_v38 }
 0x41c   : > { %v613_v43 = vsub.f32 %v609_v33, %v611_v39  ;;  %v619_v60 = vadd.f32 %v617_v34, %v615_v40 }
 0x41d   : > { %v622_v44 = vmul.f32 %v614_v41, %v614_v41  ;;  %v624_v45 = vmul.f32 %v620_v42, %v620_v42 }
 0x41e   : > { %v621_v46 = vmul.f32 %v613_v43, %v613_v43  ;;  %v623_v47 = vmul.f32 %v619_v60, %v619_v60 }
 0x41f   : > { %v626_v48 = vadd.f32 %v624_v45, %v622_v44 }
 0x420   : > { %v625_v49 = vadd.f32 %v623_v47, %v621_v46 }
 0x421   : > { %v628_v52 = vmax.f32 %v626_v48, 1e-30 }
 0x422   : > { %v627_v55 = vmax.f32 %v625_v49, 1e-30 }
 0x423   : > { %909 = vrsqrt.f32 %v628_v52 }
 0x424   : > { %911 = vrsqrt.f32 %v627_v55 }
 0x42d   : > { %v910_v15 = vpop.eup %909 }
 0x42e   : > { %v912_v18 = vpop.eup %911  ;;  %v632_v26 = vmul.f32 %v910_v15, %v614_v41  ;;  %v634_v58 = vmul.f32 %v910_v15, %v620_v42 }
 0x42f   : > { %v631_v59 = vmul.f32 %v912_v18, %v613_v43  ;;  %v633_v61 = vmul.f32 %v912_v18, %v619_v60 }
 0x430   : > { %v649_v62 = vmul.f32 %v647_v57, %v632_v26  ;;  %v653_v63 = vmul.f32 %v647_v57, %v634_v58 }
 0x431   : > { %v648_v0 = vmul.f32 %v646_v25, %v631_v59  ;;  %v652_v1 = vmul.f32 %v646_v25, %v633_v61 }
 0x432   : > { %651 = vst [vmem:[%s297_s20 + $0x8] sm:$0xff] %v649_v62  ;;  %655 = vst [vmem:[%s304_s28 + $0x8] sm:$0xff] %v653_v63 }
 0x433   : > { %650 = vst [vmem:[%s297_s20] sm:$0xff] %v648_v0  ;;  %654 = vst [vmem:[%s304_s28] sm:$0xff] %v652_v1 }
 0x434   : > { %926 = shalt.err (!%p923_p3)
}
 0x435   : > { %s927_s19 = scalar_lea.hbm %s1205_s12, 256  ;;  %s931_s25 = scalar_lea.hbm %s1292_s5, 512 }
 0x436   : > { %p928_p4 = scmp.ne.s32.totalorder %s1205_s12, %s927_s19  ;;  %p932_p9 = scmp.lt.u32.totalorder %s1205_s12, %s1292_s5 }
 0x437   : > { %p933_p10 = scmp.lt.u32.totalorder %s931_s25, %s927_s19  ;;  %p935_p12 = scmp.lt.u32.totalorder %s927_s19, %s1205_s12 }
 0x438   : > { %p929_p7 = pnand %p928_p4, %p1093_p5 }
 0x439   : > { %p934_p11 = por %p933_p10, %p932_p9 }
 0x43a   : > { %p930_p8 = pneg %p929_p7 }
 0x43b   : > { %p936_p13 = por %p935_p12, %p934_p11 }
 0x43d   : > { %p937_p0 = pnand %p936_p13, %p930_p8 }
 0x43f   : > { %940 = shalt.err (!%p937_p0)
}
 0x440   : > { %s1018_s17 = smov 128   ;;  %s662_s9 = scalar_lea.sflag [#allocation5], %s1195_s15 }
 0x441   : > { %846 = dma.vmem_to_hbm [thread:$0]  (%p1093_p5), %s1207_s26, 256, %s1205_s12, %s657_s16, %s1018_s17, %s1018_s17, %s1013_s11  }
 0x442   : > { %s941_s10 = scalar_lea.vmem %s1214_s29, 256  ;;  %s1019_s19 = smov [#allocation4]  }
 0x443   : > { %p942_p1 = scmp.ne.s32.totalorder %s1214_s29, %s941_s10  ;;  %s945_s20 = sshll.u32 %s1019_s19, 4  ;;  %s946_s20 = int_to_ptr.vmem [resolvable:$false] %s945_s20 }
 0x444   : > { %s947_s28 = scalar_lea.vmem %s946_s20, 512  ;;  %p948_p4 = scmp.lt.s32.totalorder %s1214_s29, %s946_s20 }
 0x445   : > { %p943_p2 = pnand %p942_p1, %p1093_p5  ;;  %p949_p7 = scmp.lt.s32.totalorder %s947_s28, %s941_s10 }
 0x447   : > { %p944_p3 = pneg %p943_p2  ;;  %p950_p8 = por %p949_p7, %p948_p4 }
 0x449   : > { %p951_p9 = pnand %p950_p8, %p944_p3 }
 0x44b   : > { %954 = shalt.err (!%p951_p9)
}
 0x44c   : > { %s955_s26 = scalar_lea.hbm %s1212_s14, 256  ;;  %s959_s25 = scalar_lea.hbm %s1293_s6, 512 }
 0x44d   : > { %p956_p10 = scmp.ne.s32.totalorder %s1212_s14, %s955_s26  ;;  %p960_p13 = scmp.lt.u32.totalorder %s1212_s14, %s1293_s6 }
 0x44e   : > { %p961_p0 = scmp.lt.u32.totalorder %s959_s25, %s955_s26  ;;  %p963_p2 = scmp.lt.u32.totalorder %s955_s26, %s1212_s14 }
 0x44f   : > { %p957_p11 = pnand %p956_p10, %p1093_p5 }
 0x450   : > { %p962_p1 = por %p961_p0, %p960_p13 }
 0x451   : > { %p958_p12 = pneg %p957_p11 }
 0x452   : > { %p964_p3 = por %p963_p2, %p962_p1 }
 0x454   : > { %p965_p4 = pnand %p964_p3, %p958_p12 }
 0x456   : > { %968 = shalt.err (!%p965_p4)
}
 0x457   : > { %847 = dma.vmem_to_hbm [thread:$0]  (%p1093_p5), %s1214_s29, 256, %s1212_s14, %s662_s9, %s1018_s17, %s1018_s17, %s1013_s11  }
 0x458 PF: > { %p857_p7 = scmp.ge.s32.totalorder %s1007_s24, 2  ;;  %s706_s10 = sand.u32 1, %s995_s21  }
 0x459   : > { %s707_s19 = scalar_lea.sflag [#allocation3], %s706_s10 }
 0x45a   : > { %p851_p8 = pnand %p857_p7, %p1097_p6 }
 0x45c   : > { %986 = dma.done.wait (!%p851_p8), %s707_s19, 256  }
 0x45d   : > { %988 = vsyncadd (!%p851_p8), %s707_s19, 4294967040  ;;  %s716_s7 = scalar_lea.sflag [#allocation5], %s706_s10 }
 0x45e   : > { %990 = dma.done.wait (!%p851_p8), %s716_s7, 256  }
 0x45f   : > { %992 = vsyncadd (!%p851_p8), %s716_s7, 4294967040  ;;  %p20_p5 = scmp.ge.s32.totalorder %s1080_s27, 4   ;;  %s1296_s21 = smov %s999_s22 }
 0x460   : > { %s1297_s22 = smov %s1003_s23  ;;  %s1298_s23 = smov %s1091_s30 }
 0x461   : > { %s1299_s24 = smov %s1080_s27  ;;  %22 = sbr.rel (!%p20_p5) target bundleno = 5 (0x5), region = 101 }
 0x468   :  { %721 = vsyncpa [#allocation3], 1 }
 0x469   :  { %723 = vsyncpa [#allocation3 + $0x1], 1 }
 0x46a   :  { %724 = vsyncpa [#allocation5], 1 }
 0x46b   :  { %726 = vsyncpa [#allocation5 + $0x1], 1 }

</bundles_post_ra>
